<compile_context>
chip_gen: v6e
topology: v6e:2x2x1
jax: 0.10.0
libtpu: 0.0.40
codegen_flags: <defaults>
</compile_context>

<pallas_src>
import math

import jax
import jax.numpy as jnp
from jax.experimental import pallas as pl
from jax.experimental.pallas import tpu as pltpu

_LANE = 128           # vreg lane width
_MAX_TILE_ROWS = 2048 # 2048*128*4B = 1 MiB/block; 4 operands * 2 buffers = 8 MiB


def _add_add_kernel(a_ref, b_ref, c_ref, o_ref):
    # o = c + (a + b): pure VPU elementwise work on one lane-dense tile.
    o_ref[...] = c_ref[...] + (a_ref[...] + b_ref[...])


def _add_add_impl(x102, x87, x118):
    orig_shape = x102.shape
    dtype = x102.dtype
    total = math.prod(orig_shape)

    # Lane-dense (rows, 128) slab. Only a sub-128 tail pad is ever
    # materialized (<512 B); no sublane rounding of the slab itself.
    rows = pl.cdiv(total, _LANE)
    padded = rows * _LANE

    def flat(x):
        xf = jnp.reshape(x, (-1,))
        if padded != total:  # static branch: tiny tail pad only when needed
            xf = jnp.pad(xf, (0, padded - total))
        return jnp.reshape(xf, (rows, _LANE))

    a2, b2, c2 = flat(x102), flat(x87), flat(x118)

    if rows <= _MAX_TILE_ROWS:
        # Single block == full array: (8,128) divisibility is waived, so no
        # sublane rounding, no pad copies, no output slice.
        tile_rows = rows
        grid_rows = 1
    else:
        # Large-tensor path: 8-aligned tiles; Pallas masks the ragged last
        # block (OOB input lanes only feed elementwise adds whose OOB output
        # lanes are clipped on store). grid_rows >= 2 lets "parallel"
        # semantics shard across both v7x TensorCores.
        tile_rows = _MAX_TILE_ROWS
        grid_rows = pl.cdiv(rows, tile_rows)

    spec = pl.BlockSpec((tile_rows, _LANE), lambda i: (i, 0))
    out2 = pl.pallas_call(
        _add_add_kernel,
        out_shape=jax.ShapeDtypeStruct((rows, _LANE), dtype),
        grid=(grid_rows,),
        in_specs=[spec, spec, spec],
        out_specs=spec,
        # Safe because input/output specs share the identical index_map:
        # each block is read before its own write and blocks are disjoint.
        input_output_aliases={2: 0},  # reuse (donated) x118's buffer
        compiler_params=pltpu.CompilerParams(
            dimension_semantics=("parallel",)),
    )(a2, b2, c2)

    out_flat = jnp.reshape(out2, (-1,))
    if padded != total:  # static slice back only for non-aligned shapes
        out_flat = out_flat[:total]
    return jnp.reshape(out_flat, orig_shape)


# x118 is donated so the aliased output can truly reuse its HBM buffer.
# Callers must NOT reuse x118 after this call.
add_add = jax.jit(_add_add_impl, donate_argnums=2)


if __name__ == "__main__":
    key = jax.random.PRNGKey(0)
    k1, k2, k3 = jax.random.split(key, 3)
    shape = (1, 48, 28, 28)  # matches the PyTorch module's tensors
    x102 = jax.random.normal(k1, shape, dtype=jnp.float32)
    x87 = jax.random.normal(k2, shape, dtype=jnp.float32)
    x118 = jax.random.normal(k3, shape, dtype=jnp.float32)

    # Reference computed (and materialized) before the donating call.
    ref = x118 + (x102 + x87)
    jax.block_until_ready(ref)

    out = add_add(x102, x87, x118)
    jax.block_until_ready(out)

    assert out.shape == shape
    assert out.dtype == jnp.float32
    assert jnp.allclose(out, ref, atol=1e-6, rtol=1e-6)

    print("KERNEL_OK")
</pallas_src>

<mosaic_0001>
module attributes {stable_mosaic.version = 11 : i64} {
  func.func @_add_add_kernel(%arg0: i32, %arg1: memref<294x128xf32, #tpu.memory_space<vmem>>, %arg2: memref<294x128xf32, #tpu.memory_space<vmem>>, %arg3: memref<294x128xf32, #tpu.memory_space<vmem>>, %arg4: memref<294x128xf32, #tpu.memory_space<vmem>>) attributes {dimension_semantics = [#tpu.dimension_semantics<parallel>], iteration_bounds = array<i64: 1>, scalar_prefetch = 0 : i64, scratch_operands = 0 : i64, tpu.core_type = #tpu.core_type<tc>, window_params = [{transform_indices = @transform_0, window_bounds = array<i64: 294, 128>}, {transform_indices = @transform_1, window_bounds = array<i64: 294, 128>}, {transform_indices = @transform_2, window_bounds = array<i64: 294, 128>}, {transform_indices = @transform_3, window_bounds = array<i64: 294, 128>}]} {
    %c0 = arith.constant 0 : index
    %c0_0 = arith.constant 0 : index
    %0 = vector.load %arg3[%c0, %c0_0] : memref<294x128xf32, #tpu.memory_space<vmem>>, vector<294x128xf32>
    %c0_1 = arith.constant 0 : index
    %c0_2 = arith.constant 0 : index
    %1 = vector.load %arg1[%c0_1, %c0_2] : memref<294x128xf32, #tpu.memory_space<vmem>>, vector<294x128xf32>
    %c0_3 = arith.constant 0 : index
    %c0_4 = arith.constant 0 : index
    %2 = vector.load %arg2[%c0_3, %c0_4] : memref<294x128xf32, #tpu.memory_space<vmem>>, vector<294x128xf32>
    %3 = arith.addf %1, %2 : vector<294x128xf32>
    %4 = arith.addf %0, %3 : vector<294x128xf32>
    %c0_5 = arith.constant 0 : index
    %c0_6 = arith.constant 0 : index
    %5 = vector.load %arg4[%c0_5, %c0_6] : memref<294x128xf32, #tpu.memory_space<vmem>>, vector<294x128xf32>
    tpu.vector_store %arg4[%c0_5, %c0_6], %4 {strides = array<i32>} : memref<294x128xf32, #tpu.memory_space<vmem>>, vector<294x128xf32>,
    return
  }
  func.func @transform_0(%arg0: i32) -> (i32, i32) {
    %c0_i32 = arith.constant 0 : i32
    %c0_i32_0 = arith.constant 0 : i32
    return %arg0, %c0_i32 : i32, i32
  }
  func.func @transform_1(%arg0: i32) -> (i32, i32) {
    %c0_i32 = arith.constant 0 : i32
    %c0_i32_0 = arith.constant 0 : i32
    return %arg0, %c0_i32 : i32, i32
  }
  func.func @transform_2(%arg0: i32) -> (i32, i32) {
    %c0_i32 = arith.constant 0 : i32
    %c0_i32_0 = arith.constant 0 : i32
    return %arg0, %c0_i32 : i32, i32
  }
  func.func @transform_3(%arg0: i32) -> (i32, i32) {
    %c0_i32 = arith.constant 0 : i32
    %c0_i32_0 = arith.constant 0 : i32
    return %arg0, %c0_i32 : i32, i32
  }
}

</mosaic_0001>

<bundles_post_ra>
// kernel: _add_add_impl.1
= control target key start
LH: loop header
LB: loop body
LE: loop exit
PB: predicated region body
PF: predicated region fallthrough
CT: control target
= control target key end

     0   :  { %s704_s0 = inlined_call_operand.vmem [shape: f32[294,128], index: 0, kind: input, shape index: {}]   ;;  %s705_s1 = inlined_call_operand.vmem [shape: f32[294,128], index: 1, kind: input, shape index: {}]   ;;  %s706_s2 = inlined_call_operand.vmem [shape: f32[294,128], index: 2, kind: input, shape index: {}, may-alias: {2,3}]   ;;  %s707_s3 = inlined_call_operand.vmem [shape: f32[294,128], index: 3, kind: output, shape index: {}, may-alias: {2,3}]  }
   0x1   :  { %v14_v0 = vld [vmem:[%s706_s2] sm:$0xff]  ;;  %v15_v4 = vld [vmem:[%s706_s2 + $0x8] sm:$0xff]  ;;  %v16_v8 = vld [vmem:[%s706_s2 + $0x10] sm:$0xff] }
   0x2   :  { %v51_v1 = vld [vmem:[%s704_s0] sm:$0xff]  ;;  %v52_v5 = vld [vmem:[%s704_s0 + $0x8] sm:$0xff]  ;;  %v53_v9 = vld [vmem:[%s704_s0 + $0x10] sm:$0xff] }
   0x3   :  { %v88_v2 = vld [vmem:[%s705_s1] sm:$0xff]  ;;  %v89_v6 = vld [vmem:[%s705_s1 + $0x8] sm:$0xff]  ;;  %v90_v10 = vld [vmem:[%s705_s1 + $0x10] sm:$0xff] }
   0x4   :  { %v125_v3 = vadd.f32 %v88_v2, %v51_v1  ;;  %v126_v7 = vadd.f32 %v89_v6, %v52_v5  ;;  %v127_v12 = vadd.f32 %v90_v10, %v53_v9  ;;  %v17_v13 = vld [vmem:[%s706_s2 + $0x18] sm:$0xff]  ;;  %v18_v18 = vld [vmem:[%s706_s2 + $0x20] sm:$0xff]  ;;  %v56_v24 = vld [vmem:[%s704_s0 + $0x28] sm:$0xff] }
   0x5   :  { %v54_v14 = vld [vmem:[%s704_s0 + $0x18] sm:$0xff]  ;;  %v55_v19 = vld [vmem:[%s704_s0 + $0x20] sm:$0xff]  ;;  %v93_v25 = vld [vmem:[%s705_s1 + $0x28] sm:$0xff] }
   0x6   :  { %v162_v11 = vadd.f32 %v125_v3, %v14_v0  ;;  %v91_v15 = vld [vmem:[%s705_s1 + $0x18] sm:$0xff]  ;;  %v163_v16 = vadd.f32 %v126_v7, %v15_v4  ;;  %v92_v20 = vld [vmem:[%s705_s1 + $0x20] sm:$0xff]  ;;  %v164_v21 = vadd.f32 %v127_v12, %v16_v8  ;;  %v130_v27 = vadd.f32 %v93_v25, %v56_v24  ;;  %v57_v29 = vld [vmem:[%s704_s0 + $0x30] sm:$0xff] }
   0x7   :  { %v128_v17 = vadd.f32 %v91_v15, %v54_v14  ;;  %v129_v22 = vadd.f32 %v92_v20, %v55_v19  ;;  %v94_v30 = vld [vmem:[%s705_s1 + $0x30] sm:$0xff]  ;;  %v58_v34 = vld [vmem:[%s704_s0 + $0x38] sm:$0xff]  ;;  %v59_v39 = vld [vmem:[%s704_s0 + $0x40] sm:$0xff] }
   0x8   :  { %199 = vst [vmem:[%s707_s3] sm:$0xff] %v162_v11  ;;  %v131_v32 = vadd.f32 %v94_v30, %v57_v29  ;;  %v95_v35 = vld [vmem:[%s705_s1 + $0x38] sm:$0xff]  ;;  %v96_v40 = vld [vmem:[%s705_s1 + $0x40] sm:$0xff]  ;;  %v60_v44 = vld [vmem:[%s704_s0 + $0x48] sm:$0xff] }
   0x9   :  { %v165_v26 = vadd.f32 %v128_v17, %v17_v13  ;;  %v166_v31 = vadd.f32 %v129_v22, %v18_v18  ;;  %v132_v37 = vadd.f32 %v95_v35, %v58_v34  ;;  %v133_v42 = vadd.f32 %v96_v40, %v59_v39  ;;  %v97_v45 = vld [vmem:[%s705_s1 + $0x48] sm:$0xff]  ;;  %v61_v49 = vld [vmem:[%s704_s0 + $0x50] sm:$0xff]  ;;  %v62_v54 = vld [vmem:[%s704_s0 + $0x58] sm:$0xff] }
   0xa   :  { %v134_v47 = vadd.f32 %v97_v45, %v60_v44  ;;  %v98_v50 = vld [vmem:[%s705_s1 + $0x50] sm:$0xff]  ;;  %v99_v55 = vld [vmem:[%s705_s1 + $0x58] sm:$0xff]  ;;  %v63_v59 = vld [vmem:[%s704_s0 + $0x60] sm:$0xff] }
   0xb   :  { %v135_v52 = vadd.f32 %v98_v50, %v61_v49  ;;  %v136_v57 = vadd.f32 %v99_v55, %v62_v54  ;;  %v100_v60 = vld [vmem:[%s705_s1 + $0x60] sm:$0xff]  ;;  %v64_v0 = vld [vmem:[%s704_s0 + $0x68] sm:$0xff]  ;;  %v65_v5 = vld [vmem:[%s704_s0 + $0x70] sm:$0xff] }
   0xc   :  { %v137_v62 = vadd.f32 %v100_v60, %v63_v59  ;;  %v101_v1 = vld [vmem:[%s705_s1 + $0x68] sm:$0xff]  ;;  %v102_v6 = vld [vmem:[%s705_s1 + $0x70] sm:$0xff]  ;;  %v66_v10 = vld [vmem:[%s704_s0 + $0x78] sm:$0xff] }
   0xd   :  { %v138_v3 = vadd.f32 %v101_v1, %v64_v0  ;;  %v139_v8 = vadd.f32 %v102_v6, %v65_v5  ;;  %v103_v11 = vld [vmem:[%s705_s1 + $0x78] sm:$0xff]  ;;  %v67_v15 = vld [vmem:[%s704_s0 + $0x80] sm:$0xff]  ;;  %v68_v20 = vld [vmem:[%s704_s0 + $0x88] sm:$0xff] }
   0xe   :  { %v140_v13 = vadd.f32 %v103_v11, %v66_v10  ;;  %v69_v25 = vld [vmem:[%s704_s0 + $0x90] sm:$0xff]  ;;  %v70_v30 = vld [vmem:[%s704_s0 + $0x98] sm:$0xff]  ;;  %v71_v35 = vld [vmem:[%s704_s0 + $0xa0] sm:$0xff] }
   0xf   :  { %v19_v23 = vld [vmem:[%s706_s2 + $0x28] sm:$0xff]  ;;  %v73_v45 = vld [vmem:[%s704_s0 + $0xb0] sm:$0xff]  ;;  %v74_v50 = vld [vmem:[%s704_s0 + $0xb8] sm:$0xff] }
  0x10   :  { %200 = vst [vmem:[%s707_s3 + $0x8] sm:$0xff] %v163_v16  ;;  %v167_v36 = vadd.f32 %v130_v27, %v19_v23  ;;  %v104_v16 = vld [vmem:[%s705_s1 + $0x80] sm:$0xff]  ;;  %v72_v40 = vld [vmem:[%s704_s0 + $0xa8] sm:$0xff]  ;;  %v77_v1 = vld [vmem:[%s704_s0 + $0xd0] sm:$0xff] }
  0x11   :  { %v141_v18 = vadd.f32 %v104_v16, %v67_v15  ;;  %v75_v55 = vld [vmem:[%s704_s0 + $0xc0] sm:$0xff]  ;;  %v76_v60 = vld [vmem:[%s704_s0 + $0xc8] sm:$0xff]  ;;  %v78_v6 = vld [vmem:[%s704_s0 + $0xd8] sm:$0xff] }
  0x12   :  { %v79_v11 = vld [vmem:[%s704_s0 + $0xe0] sm:$0xff]  ;;  %v80_v16 = vld [vmem:[%s704_s0 + $0xe8] sm:$0xff] }
  0x17   :  { %v20_v28 = vld [vmem:[%s706_s2 + $0x30] sm:$0xff] }
  0x18   :  { %201 = vst [vmem:[%s707_s3 + $0x10] sm:$0xff] %v164_v21  ;;  %v168_v41 = vadd.f32 %v131_v32, %v20_v28  ;;  %v105_v21 = vld [vmem:[%s705_s1 + $0x88] sm:$0xff] }
  0x19   :  { %v142_v23 = vadd.f32 %v105_v21, %v68_v20  ;;  %v81_v21 = vld [vmem:[%s704_s0 + $0xf0] sm:$0xff] }
  0x1f   :  { %v21_v33 = vld [vmem:[%s706_s2 + $0x38] sm:$0xff] }
  0x20   :  { %202 = vst [vmem:[%s707_s3 + $0x18] sm:$0xff] %v165_v26  ;;  %v169_v46 = vadd.f32 %v132_v37, %v21_v33  ;;  %v106_v26 = vld [vmem:[%s705_s1 + $0x90] sm:$0xff] }
  0x21   :  { %v143_v28 = vadd.f32 %v106_v26, %v69_v25  ;;  %v82_v26 = vld [vmem:[%s704_s0 + $0xf8] sm:$0xff] }
  0x27   :  { %v22_v38 = vld [vmem:[%s706_s2 + $0x40] sm:$0xff] }
  0x28   :  { %203 = vst [vmem:[%s707_s3 + $0x20] sm:$0xff] %v166_v31  ;;  %v170_v51 = vadd.f32 %v133_v42, %v22_v38  ;;  %v107_v31 = vld [vmem:[%s705_s1 + $0x98] sm:$0xff] }
  0x29   :  { %v144_v33 = vadd.f32 %v107_v31, %v70_v30  ;;  %v83_v31 = vld [vmem:[%s704_s0 + $0x100] sm:$0xff] }
  0x2f   :  { %v23_v43 = vld [vmem:[%s706_s2 + $0x48] sm:$0xff] }
  0x30   :  { %204 = vst [vmem:[%s707_s3 + $0x28] sm:$0xff] %v167_v36  ;;  %v171_v56 = vadd.f32 %v134_v47, %v23_v43  ;;  %v108_v36 = vld [vmem:[%s705_s1 + $0xa0] sm:$0xff] }
  0x31   :  { %v145_v38 = vadd.f32 %v108_v36, %v71_v35  ;;  %v84_v36 = vld [vmem:[%s704_s0 + $0x108] sm:$0xff] }
  0x37   :  { %v24_v48 = vld [vmem:[%s706_s2 + $0x50] sm:$0xff] }
  0x38   :  { %205 = vst [vmem:[%s707_s3 + $0x30] sm:$0xff] %v168_v41  ;;  %v172_v61 = vadd.f32 %v135_v52, %v24_v48  ;;  %v109_v41 = vld [vmem:[%s705_s1 + $0xa8] sm:$0xff] }
  0x39   :  { %v146_v43 = vadd.f32 %v109_v41, %v72_v40  ;;  %v85_v41 = vld [vmem:[%s704_s0 + $0x110] sm:$0xff] }
  0x3f   :  { %v25_v53 = vld [vmem:[%s706_s2 + $0x58] sm:$0xff] }
  0x40   :  { %206 = vst [vmem:[%s707_s3 + $0x38] sm:$0xff] %v169_v46  ;;  %v173_v2 = vadd.f32 %v136_v57, %v25_v53  ;;  %v110_v46 = vld [vmem:[%s705_s1 + $0xb0] sm:$0xff] }
  0x41   :  { %v147_v48 = vadd.f32 %v110_v46, %v73_v45  ;;  %v86_v46 = vld [vmem:[%s704_s0 + $0x118] sm:$0xff] }
  0x47   :  { %v26_v58 = vld [vmem:[%s706_s2 + $0x60] sm:$0xff] }
  0x48   :  { %207 = vst [vmem:[%s707_s3 + $0x40] sm:$0xff] %v170_v51  ;;  %v174_v7 = vadd.f32 %v137_v62, %v26_v58  ;;  %v111_v51 = vld [vmem:[%s705_s1 + $0xb8] sm:$0xff] }
  0x49   :  { %v148_v53 = vadd.f32 %v111_v51, %v74_v50  ;;  %v87_v51 = vld [vmem:[%s704_s0 + $0x120] sm:$0x3f] }
  0x4f   :  { %v27_v63 = vld [vmem:[%s706_s2 + $0x68] sm:$0xff] }
  0x50   :  { %208 = vst [vmem:[%s707_s3 + $0x48] sm:$0xff] %v171_v56  ;;  %v175_v12 = vadd.f32 %v138_v3, %v27_v63  ;;  %v112_v56 = vld [vmem:[%s705_s1 + $0xc0] sm:$0xff] }
  0x51   :  { %v149_v58 = vadd.f32 %v112_v56, %v75_v55 }
  0x57   :  { %v28_v4 = vld [vmem:[%s706_s2 + $0x70] sm:$0xff] }
  0x58   :  { %209 = vst [vmem:[%s707_s3 + $0x50] sm:$0xff] %v172_v61  ;;  %v176_v17 = vadd.f32 %v139_v8, %v28_v4  ;;  %v113_v61 = vld [vmem:[%s705_s1 + $0xc8] sm:$0xff] }
  0x59   :  { %v150_v63 = vadd.f32 %v113_v61, %v76_v60 }
  0x5f   :  { %v29_v9 = vld [vmem:[%s706_s2 + $0x78] sm:$0xff] }
  0x60   :  { %210 = vst [vmem:[%s707_s3 + $0x58] sm:$0xff] %v173_v2  ;;  %v177_v22 = vadd.f32 %v140_v13, %v29_v9  ;;  %v114_v2 = vld [vmem:[%s705_s1 + $0xd0] sm:$0xff] }
  0x61   :  { %v151_v4 = vadd.f32 %v114_v2, %v77_v1 }
  0x67   :  { %v30_v14 = vld [vmem:[%s706_s2 + $0x80] sm:$0xff] }
  0x68   :  { %211 = vst [vmem:[%s707_s3 + $0x60] sm:$0xff] %v174_v7  ;;  %v178_v27 = vadd.f32 %v141_v18, %v30_v14  ;;  %v115_v7 = vld [vmem:[%s705_s1 + $0xd8] sm:$0xff] }
  0x69   :  { %v152_v9 = vadd.f32 %v115_v7, %v78_v6 }
  0x6f   :  { %v31_v19 = vld [vmem:[%s706_s2 + $0x88] sm:$0xff] }
  0x70   :  { %212 = vst [vmem:[%s707_s3 + $0x68] sm:$0xff] %v175_v12  ;;  %v179_v32 = vadd.f32 %v142_v23, %v31_v19  ;;  %v116_v12 = vld [vmem:[%s705_s1 + $0xe0] sm:$0xff] }
  0x71   :  { %v153_v14 = vadd.f32 %v116_v12, %v79_v11 }
  0x77   :  { %v32_v24 = vld [vmem:[%s706_s2 + $0x90] sm:$0xff] }
  0x78   :  { %213 = vst [vmem:[%s707_s3 + $0x70] sm:$0xff] %v176_v17  ;;  %v180_v37 = vadd.f32 %v143_v28, %v32_v24  ;;  %v117_v17 = vld [vmem:[%s705_s1 + $0xe8] sm:$0xff] }
  0x79   :  { %v154_v19 = vadd.f32 %v117_v17, %v80_v16 }
  0x7f   :  { %v33_v29 = vld [vmem:[%s706_s2 + $0x98] sm:$0xff] }
  0x80   :  { %214 = vst [vmem:[%s707_s3 + $0x78] sm:$0xff] %v177_v22  ;;  %v181_v42 = vadd.f32 %v144_v33, %v33_v29  ;;  %v118_v22 = vld [vmem:[%s705_s1 + $0xf0] sm:$0xff] }
  0x81   :  { %v155_v24 = vadd.f32 %v118_v22, %v81_v21 }
  0x87   :  { %v34_v34 = vld [vmem:[%s706_s2 + $0xa0] sm:$0xff] }
  0x88   :  { %215 = vst [vmem:[%s707_s3 + $0x80] sm:$0xff] %v178_v27  ;;  %v182_v47 = vadd.f32 %v145_v38, %v34_v34  ;;  %v119_v27 = vld [vmem:[%s705_s1 + $0xf8] sm:$0xff] }
  0x89   :  { %v156_v29 = vadd.f32 %v119_v27, %v82_v26 }
  0x8f   :  { %v35_v39 = vld [vmem:[%s706_s2 + $0xa8] sm:$0xff] }
  0x90   :  { %216 = vst [vmem:[%s707_s3 + $0x88] sm:$0xff] %v179_v32  ;;  %v183_v52 = vadd.f32 %v146_v43, %v35_v39  ;;  %v120_v32 = vld [vmem:[%s705_s1 + $0x100] sm:$0xff] }
  0x91   :  { %v157_v34 = vadd.f32 %v120_v32, %v83_v31 }
  0x97   :  { %v36_v44 = vld [vmem:[%s706_s2 + $0xb0] sm:$0xff] }
  0x98   :  { %217 = vst [vmem:[%s707_s3 + $0x90] sm:$0xff] %v180_v37  ;;  %v184_v57 = vadd.f32 %v147_v48, %v36_v44  ;;  %v121_v37 = vld [vmem:[%s705_s1 + $0x108] sm:$0xff] }
  0x99   :  { %v158_v39 = vadd.f32 %v121_v37, %v84_v36 }
  0x9f   :  { %v37_v49 = vld [vmem:[%s706_s2 + $0xb8] sm:$0xff] }
  0xa0   :  { %218 = vst [vmem:[%s707_s3 + $0x98] sm:$0xff] %v181_v42  ;;  %v185_v62 = vadd.f32 %v148_v53, %v37_v49  ;;  %v122_v42 = vld [vmem:[%s705_s1 + $0x110] sm:$0xff] }
  0xa1   :  { %v159_v44 = vadd.f32 %v122_v42, %v85_v41 }
  0xa7   :  { %v38_v54 = vld [vmem:[%s706_s2 + $0xc0] sm:$0xff] }
  0xa8   :  { %219 = vst [vmem:[%s707_s3 + $0xa0] sm:$0xff] %v182_v47  ;;  %v186_v3 = vadd.f32 %v149_v58, %v38_v54  ;;  %v123_v47 = vld [vmem:[%s705_s1 + $0x118] sm:$0xff] }
  0xa9   :  { %v160_v49 = vadd.f32 %v123_v47, %v86_v46 }
  0xaf   :  { %v39_v59 = vld [vmem:[%s706_s2 + $0xc8] sm:$0xff] }
  0xb0   :  { %220 = vst [vmem:[%s707_s3 + $0xa8] sm:$0xff] %v183_v52  ;;  %v187_v8 = vadd.f32 %v150_v63, %v39_v59  ;;  %v124_v52 = vld [vmem:[%s705_s1 + $0x120] sm:$0x3f] }
  0xb1   :  { %v161_v54 = vadd.f32 %v124_v52, %v87_v51 }
  0xb7   :  { %v40_v0 = vld [vmem:[%s706_s2 + $0xd0] sm:$0xff] }
  0xb8   :  { %221 = vst [vmem:[%s707_s3 + $0xb0] sm:$0xff] %v184_v57  ;;  %v188_v13 = vadd.f32 %v151_v4, %v40_v0 }
  0xbf   :  { %v41_v5 = vld [vmem:[%s706_s2 + $0xd8] sm:$0xff] }
  0xc0   :  { %222 = vst [vmem:[%s707_s3 + $0xb8] sm:$0xff] %v185_v62  ;;  %v189_v18 = vadd.f32 %v152_v9, %v41_v5 }
  0xc7   :  { %v42_v10 = vld [vmem:[%s706_s2 + $0xe0] sm:$0xff] }
  0xc8   :  { %223 = vst [vmem:[%s707_s3 + $0xc0] sm:$0xff] %v186_v3  ;;  %v190_v23 = vadd.f32 %v153_v14, %v42_v10 }
  0xcf   :  { %v43_v15 = vld [vmem:[%s706_s2 + $0xe8] sm:$0xff] }
  0xd0   :  { %224 = vst [vmem:[%s707_s3 + $0xc8] sm:$0xff] %v187_v8  ;;  %v191_v28 = vadd.f32 %v154_v19, %v43_v15 }
  0xd7   :  { %v44_v20 = vld [vmem:[%s706_s2 + $0xf0] sm:$0xff] }
  0xd8   :  { %225 = vst [vmem:[%s707_s3 + $0xd0] sm:$0xff] %v188_v13  ;;  %v192_v33 = vadd.f32 %v155_v24, %v44_v20 }
  0xdf   :  { %v45_v25 = vld [vmem:[%s706_s2 + $0xf8] sm:$0xff] }
  0xe0   :  { %226 = vst [vmem:[%s707_s3 + $0xd8] sm:$0xff] %v189_v18  ;;  %v193_v38 = vadd.f32 %v156_v29, %v45_v25 }
  0xe7   :  { %v46_v30 = vld [vmem:[%s706_s2 + $0x100] sm:$0xff] }
  0xe8   :  { %227 = vst [vmem:[%s707_s3 + $0xe0] sm:$0xff] %v190_v23  ;;  %v194_v43 = vadd.f32 %v157_v34, %v46_v30 }
  0xef   :  { %v47_v35 = vld [vmem:[%s706_s2 + $0x108] sm:$0xff] }
  0xf0   :  { %228 = vst [vmem:[%s707_s3 + $0xe8] sm:$0xff] %v191_v28  ;;  %v195_v48 = vadd.f32 %v158_v39, %v47_v35 }
  0xf7   :  { %v48_v40 = vld [vmem:[%s706_s2 + $0x110] sm:$0xff] }
  0xf8   :  { %229 = vst [vmem:[%s707_s3 + $0xf0] sm:$0xff] %v192_v33  ;;  %v196_v53 = vadd.f32 %v159_v44, %v48_v40 }
  0xff   :  { %v49_v45 = vld [vmem:[%s706_s2 + $0x118] sm:$0xff] }
 0x100   :  { %230 = vst [vmem:[%s707_s3 + $0xf8] sm:$0xff] %v193_v38  ;;  %v197_v55 = vadd.f32 %v160_v49, %v49_v45 }
 0x107   :  { %v50_v50 = vld [vmem:[%s706_s2 + $0x120] sm:$0x3f] }
 0x108   :  { %231 = vst [vmem:[%s707_s3 + $0x100] sm:$0xff] %v194_v43  ;;  %232 = vst [vmem:[%s707_s3 + $0x108] sm:$0xff] %v195_v48  ;;  %v198_v56 = vadd.f32 %v161_v54, %v50_v50 }
 0x109   :  { %233 = vst [vmem:[%s707_s3 + $0x110] sm:$0xff] %v196_v53  ;;  %234 = vst [vmem:[%s707_s3 + $0x118] sm:$0xff] %v197_v55 }
 0x10a   :  { %235 = vst [vmem:[%s707_s3 + $0x120] sm:$0x3f] %v198_v56 }

</bundles_post_ra>
